<compile_context>
chip_gen: v5e
topology: v5e:2x2
jax: 0.10.0
libtpu: 0.0.40
codegen_flags: <defaults>
</compile_context>

<pallas_src>
import functools

import jax
import jax.numpy as jnp
from jax.experimental import pallas as pl
from jax.experimental.pallas import tpu as pltpu


def _round_up(x: int, m: int) -> int:
    return (x + m - 1) // m * m


def _corr2d_kernel(x_ref, w_ref, b_ref, o_ref, *, kh: int, kw: int):
    """One image per grid step.

    x_ref : VMEM (1, H_pad, W_pad)          float32
    w_ref : SMEM (kh*kw,)                   float32  (scalar reads)
    b_ref : SMEM (1,)                       float32
    o_ref : VMEM (1, h_out_pad, w_out_pad)  float32  (lane-dense)
    """
    h_out = o_ref.shape[1]
    w_out = o_ref.shape[2]

    # Load the whole (small) image into vregs once; every tap slices this
    # value instead of issuing kh*kw separate ref slices.
    xv = x_ref[0]

    # Pull all scalar weights + bias out of SMEM before the unrolled loops.
    w = [w_ref[t] for t in range(kh * kw)]
    bias = b_ref[0]

    acc = None
    # Hoist the lane (column) shift out of the row loop: kw lane
    # realignments total instead of kh*kw; the kh row-offset (sublane)
    # slices per shifted copy are cheap.
    for j in range(kw):
        col = xv[:, j:j + w_out]                      # lane-shifted copy
        for i in range(kh):
            tap = col[i:i + h_out, :] * w[i * kw + j]
            acc = tap if acc is None else acc + tap

    o_ref[0] = acc + bias


def conv2d_pallas(x: jax.Array, weight: jax.Array, bias: jax.Array) -> jax.Array:
    """Equivalent of Conv2D.forward(x) == corr2d(x, weight) + bias.

    Accepts x of shape (H, W) (module semantics) or a batch (B, H, W), which
    is pushed through a single pallas_call with the batch on a parallel grid
    axis to amortize launch overhead.
    """
    squeeze = x.ndim == 2
    if squeeze:
        x = x[None]
    B, H, W = x.shape
    kh, kw = weight.shape
    h_out, w_out = H - kh + 1, W - kw + 1

    # Lane-dense padded tile sizes (output last dim multiple of 128,
    # second-to-last multiple of 8; input padded accordingly).
    w_out_pad = _round_up(max(w_out, 128), 128)
    h_out_pad = _round_up(h_out, 8)
    W_pad = _round_up(w_out_pad + kw - 1, 128)
    H_pad = _round_up(h_out_pad + kh - 1, 8)

    x_pad = jnp.pad(x.astype(jnp.float32),
                    ((0, 0), (0, H_pad - H), (0, W_pad - W)))
    w_flat = weight.reshape(-1).astype(jnp.float32)
    b_vec = jnp.reshape(bias, (1,)).astype(jnp.float32)

    kernel = functools.partial(_corr2d_kernel, kh=kh, kw=kw)

    out_pad = pl.pallas_call(
        kernel,
        out_shape=jax.ShapeDtypeStruct((B, h_out_pad, w_out_pad), jnp.float32),
        grid_spec=pltpu.PrefetchScalarGridSpec(
            num_scalar_prefetch=0,
            grid=(B,),
            in_specs=[
                pl.BlockSpec((1, H_pad, W_pad), lambda bi: (bi, 0, 0)),      # x
                pl.BlockSpec(memory_space=pltpu.MemorySpace.SMEM),           # weight
                pl.BlockSpec(memory_space=pltpu.MemorySpace.SMEM),           # bias
            ],
            out_specs=pl.BlockSpec((1, h_out_pad, w_out_pad),
                                   lambda bi: (bi, 0, 0)),
        ),
        compiler_params=pltpu.CompilerParams(
            dimension_semantics=("parallel",)),   # shards batch over v7x's 2 TCs
    )(x_pad, w_flat, b_vec)

    out = out_pad[:, :h_out, :w_out]
    return out[0] if squeeze else out


def _corr2d_ref(x, k):
    """Pure-JAX reference of corr2d for correctness checking (single image)."""
    kh, kw = k.shape
    h_out, w_out = x.shape[0] - kh + 1, x.shape[1] - kw + 1
    out = jnp.zeros((h_out, w_out), jnp.float32)
    for i in range(kh):
        for j in range(kw):
            out = out + x[i:i + h_out, j:j + w_out] * k[i, j]
    return out


if __name__ == "__main__":
    key = jax.random.PRNGKey(0)
    k_x, k_w = jax.random.split(key)

    # Small shapes consistent with the module: 16x16 images, 3x3 kernel.
    B, H, W = 8, 16, 16
    kernel_size = (3, 3)

    xs = jax.random.normal(k_x, (B, H, W), dtype=jnp.float32)
    # torch.rand(kernel_size) -> uniform [0, 1)
    weight = jax.random.uniform(k_w, kernel_size, dtype=jnp.float32)
    # torch.zeros(1)
    bias = jnp.zeros((1,), dtype=jnp.float32)

    conv2d = jax.jit(conv2d_pallas)

    # Batched path (throughput: one pallas_call for all images).
    out_b = jax.block_until_ready(conv2d(xs, weight, bias))
    # Single-image path (exact module semantics).
    out_1 = jax.block_until_ready(conv2d(xs[0], weight, bias))

    h_out, w_out = H - kernel_size[0] + 1, W - kernel_size[1] + 1
    assert out_b.shape == (B, h_out, w_out)
    assert out_1.shape == (h_out, w_out)

    expected_b = jnp.stack([_corr2d_ref(xs[i], weight) + bias[0] for i in range(B)])
    assert jnp.allclose(out_b, expected_b, atol=1e-5, rtol=1e-5)
    assert jnp.allclose(out_1, expected_b[0], atol=1e-5, rtol=1e-5)

    print("KERNEL_OK")
</pallas_src>

<mosaic_0001>
module attributes {stable_mosaic.version = 11 : i64} {
  func.func @_corr2d_kernel(%arg0: i32, %arg1: memref<1x24x256xf32, #tpu.memory_space<vmem>>, %arg2: memref<9xf32, #tpu.memory_space<smem>>, %arg3: memref<1xf32, #tpu.memory_space<smem>>, %arg4: memref<1x16x128xf32, #tpu.memory_space<vmem>>) attributes {dimension_semantics = [#tpu.dimension_semantics<parallel>], iteration_bounds = array<i64: 8>, scalar_prefetch = 0 : i64, scratch_operands = 0 : i64, tpu.core_type = #tpu.core_type<tc>, window_params = [{transform_indices = @transform_0, window_bounds = array<i64: 1, 24, 256>}, {transform_indices = @transform_1, window_bounds = array<i64: 9>}, {transform_indices = @transform_2, window_bounds = array<i64: 1>}, {transform_indices = @transform_3, window_bounds = array<i64: 1, 16, 128>}]} {
    %c0 = arith.constant 0 : index
    %c0_0 = arith.constant 0 : index
    %c0_1 = arith.constant 0 : index
    %0 = vector.load %arg1[%c0, %c0_0, %c0_1] : memref<1x24x256xf32, #tpu.memory_space<vmem>>, vector<1x24x256xf32>
    %1 = vector.shape_cast %0 : vector<1x24x256xf32> to vector<24x256xf32>
    %c0_2 = arith.constant 0 : index
    %2 = memref.load %arg2[%c0_2] : memref<9xf32, #tpu.memory_space<smem>>
    %c1 = arith.constant 1 : index
    %3 = memref.load %arg2[%c1] : memref<9xf32, #tpu.memory_space<smem>>
    %c2 = arith.constant 2 : index
    %4 = memref.load %arg2[%c2] : memref<9xf32, #tpu.memory_space<smem>>
    %c3 = arith.constant 3 : index
    %5 = memref.load %arg2[%c3] : memref<9xf32, #tpu.memory_space<smem>>
    %c4 = arith.constant 4 : index
    %6 = memref.load %arg2[%c4] : memref<9xf32, #tpu.memory_space<smem>>
    %c5 = arith.constant 5 : index
    %7 = memref.load %arg2[%c5] : memref<9xf32, #tpu.memory_space<smem>>
    %c6 = arith.constant 6 : index
    %8 = memref.load %arg2[%c6] : memref<9xf32, #tpu.memory_space<smem>>
    %c7 = arith.constant 7 : index
    %9 = memref.load %arg2[%c7] : memref<9xf32, #tpu.memory_space<smem>>
    %c8 = arith.constant 8 : index
    %10 = memref.load %arg2[%c8] : memref<9xf32, #tpu.memory_space<smem>>
    %c0_3 = arith.constant 0 : index
    %11 = memref.load %arg3[%c0_3] : memref<1xf32, #tpu.memory_space<smem>>
    %12 = vector.extract_strided_slice %1 {offsets = [0, 0], sizes = [24, 128], strides = [1, 1]} : vector<24x256xf32> to vector<24x128xf32>
    %13 = vector.extract_strided_slice %12 {offsets = [0, 0], sizes = [16, 128], strides = [1, 1]} : vector<24x128xf32> to vector<16x128xf32>
    %14 = vector.broadcast %2 : f32 to vector<16x128xf32>
    %15 = arith.mulf %13, %14 : vector<16x128xf32>
    %16 = vector.extract_strided_slice %12 {offsets = [1, 0], sizes = [16, 128], strides = [1, 1]} : vector<24x128xf32> to vector<16x128xf32>
    %17 = vector.broadcast %5 : f32 to vector<16x128xf32>
    %18 = arith.mulf %16, %17 : vector<16x128xf32>
    %19 = arith.addf %15, %18 : vector<16x128xf32>
    %20 = vector.extract_strided_slice %12 {offsets = [2, 0], sizes = [16, 128], strides = [1, 1]} : vector<24x128xf32> to vector<16x128xf32>
    %21 = vector.broadcast %8 : f32 to vector<16x128xf32>
    %22 = arith.mulf %20, %21 : vector<16x128xf32>
    %23 = arith.addf %19, %22 : vector<16x128xf32>
    %24 = vector.extract_strided_slice %1 {offsets = [0, 1], sizes = [24, 128], strides = [1, 1]} : vector<24x256xf32> to vector<24x128xf32>
    %25 = vector.extract_strided_slice %24 {offsets = [0, 0], sizes = [16, 128], strides = [1, 1]} : vector<24x128xf32> to vector<16x128xf32>
    %26 = vector.broadcast %3 : f32 to vector<16x128xf32>
    %27 = arith.mulf %25, %26 : vector<16x128xf32>
    %28 = arith.addf %23, %27 : vector<16x128xf32>
    %29 = vector.extract_strided_slice %24 {offsets = [1, 0], sizes = [16, 128], strides = [1, 1]} : vector<24x128xf32> to vector<16x128xf32>
    %30 = vector.broadcast %6 : f32 to vector<16x128xf32>
    %31 = arith.mulf %29, %30 : vector<16x128xf32>
    %32 = arith.addf %28, %31 : vector<16x128xf32>
    %33 = vector.extract_strided_slice %24 {offsets = [2, 0], sizes = [16, 128], strides = [1, 1]} : vector<24x128xf32> to vector<16x128xf32>
    %34 = vector.broadcast %9 : f32 to vector<16x128xf32>
    %35 = arith.mulf %33, %34 : vector<16x128xf32>
    %36 = arith.addf %32, %35 : vector<16x128xf32>
    %37 = vector.extract_strided_slice %1 {offsets = [0, 2], sizes = [24, 128], strides = [1, 1]} : vector<24x256xf32> to vector<24x128xf32>
    %38 = vector.extract_strided_slice %37 {offsets = [0, 0], sizes = [16, 128], strides = [1, 1]} : vector<24x128xf32> to vector<16x128xf32>
    %39 = vector.broadcast %4 : f32 to vector<16x128xf32>
    %40 = arith.mulf %38, %39 : vector<16x128xf32>
    %41 = arith.addf %36, %40 : vector<16x128xf32>
    %42 = vector.extract_strided_slice %37 {offsets = [1, 0], sizes = [16, 128], strides = [1, 1]} : vector<24x128xf32> to vector<16x128xf32>
    %43 = vector.broadcast %7 : f32 to vector<16x128xf32>
    %44 = arith.mulf %42, %43 : vector<16x128xf32>
    %45 = arith.addf %41, %44 : vector<16x128xf32>
    %46 = vector.extract_strided_slice %37 {offsets = [2, 0], sizes = [16, 128], strides = [1, 1]} : vector<24x128xf32> to vector<16x128xf32>
    %47 = vector.broadcast %10 : f32 to vector<16x128xf32>
    %48 = arith.mulf %46, %47 : vector<16x128xf32>
    %49 = arith.addf %45, %48 : vector<16x128xf32>
    %50 = vector.broadcast %11 : f32 to vector<16x128xf32>
    %51 = arith.addf %49, %50 : vector<16x128xf32>
    %c0_4 = arith.constant 0 : index
    %c0_5 = arith.constant 0 : index
    %c0_6 = arith.constant 0 : index
    %52 = vector.load %arg4[%c0_4, %c0_5, %c0_6] : memref<1x16x128xf32, #tpu.memory_space<vmem>>, vector<1x16x128xf32>
    %53 = vector.shape_cast %52 : vector<1x16x128xf32> to vector<16x128xf32>
    %54 = vector.shape_cast %51 : vector<16x128xf32> to vector<1x16x128xf32>
    tpu.vector_store %arg4[%c0_4, %c0_5, %c0_6], %54 {strides = array<i32>} : memref<1x16x128xf32, #tpu.memory_space<vmem>>, vector<1x16x128xf32>,
    return
  }
  func.func @transform_0(%arg0: i32) -> (i32, i32, i32) {
    %c0_i32 = arith.constant 0 : i32
    %c0_i32_0 = arith.constant 0 : i32
    %c0_i32_1 = arith.constant 0 : i32
    return %arg0, %c0_i32, %c0_i32_0 : i32, i32, i32
  }
  func.func @transform_1(%arg0: i32) -> i32 {
    %c0_i32 = arith.constant 0 : i32
    %c0_i32_0 = arith.constant 0 : i32
    return %c0_i32 : i32
  }
  func.func @transform_2(%arg0: i32) -> i32 {
    %c0_i32 = arith.constant 0 : i32
    %c0_i32_0 = arith.constant 0 : i32
    return %c0_i32 : i32
  }
  func.func @transform_3(%arg0: i32) -> (i32, i32, i32) {
    %c0_i32 = arith.constant 0 : i32
    %c0_i32_0 = arith.constant 0 : i32
    %c0_i32_1 = arith.constant 0 : i32
    return %arg0, %c0_i32, %c0_i32_0 : i32, i32, i32
  }
}

</mosaic_0001>

<bundles_post_ra>
// kernel: conv2d_pallas.1
= control target key start
LH: loop header
LB: loop body
LE: loop exit
PB: predicated region body
PF: predicated region fallthrough
CT: control target
= control target key end

     0   :  { %s729_s0 = inlined_call_operand.vmem [shape: f32[8,24,256], index: 0, kind: input, shape index: {}]   ;;  %s730_s1 = inlined_call_operand.vmem [shape: f32[9], index: 1, kind: input, shape index: {}]   ;;  %s731_s2 = inlined_call_operand.<no memory space> [shape: f32[1], index: 2, kind: input, shape index: {}]   ;;  %s732_s3 = inlined_call_operand.vmem [shape: f32[8,16,128], index: 3, kind: output, shape index: {}]  }
   0x1   :  { %8 = sst [smem:[#allocation2]] %s731_s2 }
   0x2   :  { %9 = vsyncpa [#allocation4], 0  ;;  %s603_s14 = smov 0  }
   0x3 LB: > { %s507_s15 = sadd.s32 4294967295, %s575_s14   ;;  %p509_p0 = scmp.ge.s32.totalorder %s575_s14, 1  ;;  %s575_s14 = sphi %s603_s14, %s15_s14  }
   0x4   : > { %p114_p1 = scmp.lt.s32.totalorder %s575_s14, 9  ;;  %s126_s18 = sshll.u32 %s730_s1, 4  ;;  %s127_s18 = int_to_ptr.vmem [resolvable:$true] %s126_s18 }
   0x5   : > { %p537_p3 = scmp.eq.s32.totalorder %s507_s15, 0  ;;  %s577_s2 = smov [#allocation3]  }
   0x6   : > { %p115_p2 = pnand %p509_p0, %p114_p1 }
   0x8   : > { %p533_p4 = pneg %p115_p2  ;;  %150 = sbr.rel (%p115_p2) target bundleno = 203 (0xcb), region = 32 }
   0xa   : > { %p534_p5 = pnand %p537_p3, %p533_p4 }
   0xc   : > { %536 = dma.vmem_to_smem (!%p534_p5), %s127_s18, 16, %s577_s2, [#allocation4]  }
   0xd   : > { %570 = dma.done.wait (%p537_p3), [#allocation4], 16  }
   0xe   : > { %572 = vsyncadd (%p537_p3), [#allocation4], 4294967280 }
   0xf   : > { %157 = sfence }
  0x10   : > { %p176_p6 = scmp.lt.s32.totalorder %s507_s15, 7  ;;  %s517_s19 = sld [smem:[#allocation3 + $0x1]]  ;;  %vm212_vm0 = vcmask 1046528   ;;  %vm229_vm1 = vcmask 1045504   ;;  %vm256_vm2 = vcmask 1039360   ;;  %vm354_vm3 = vcmask 1031168  }
  0x11   : > { %s520_s20 = sld [smem:[#allocation3 + $0x4]]  ;;  %s578_s25 = smov 127  }
  0x12   : > { %s734_s15 = smov (!%p176_p6, %s507_s15), 7  ;;  %s523_s26 = sld [smem:[#allocation3 + $0x7]] }
  0x13   : > { %s528_s21 = smul.u32 48, %s734_s15  ;;  %s518_s27 = sld [smem:[#allocation3 + $0x2]] }
  0x14   : > { %s521_s28 = sld [smem:[#allocation3 + $0x5]]  ;;  %s579_s29 = smov 126  }
  0x15   : > { %s180_s24 = scalar_lea.vmem %s729_s0, %s528_s21  ;;  %s524_s30 = sld [smem:[#allocation3 + $0x8]] }
  0x16   : > { %v239_v0 = vstv %s517_s19  ;;  %v620_v1 = vld [vmem:[%s180_s24 + $0x10] sm:$0xff]  ;;  %v622_v2 = vld [vmem:[%s180_s24] sm:$0xff]  ;;  %v630_v8 = vld [vmem:[%s180_s24 + $0x8] sm:$0xff]  ;;  %s519_s4 = sld [smem:[#allocation3 + $0x3]]  ;;  %s527_s8 = sshll.u32 %s734_s15, 4 }
  0x17   : > { %v263_v3 = vstv %s520_s20  ;;  %v242_v4 = vmul.f32 %v239_v0, %v620_v1  ;;  %v240_v5 = vmul.f32 %v239_v0, %v622_v2  ;;  %v632_v9 = vld [vmem:[%s180_s24 + $0x18] sm:$0xff]  ;;  %v635_v13 = vld [vmem:[%s180_s24 + $0x28] sm:$0xff]  ;;  %v637_v14 = vld [vmem:[%s180_s24 + $0x20] sm:$0xff]  ;;  %v241_v18 = vmul.f32 %v239_v0, %v630_v8  ;;  %s522_s5 = sld [smem:[#allocation3 + $0x6]]  ;;  %s185_s11 = scalar_lea.vmem %s732_s3, %s527_s8 }
  0x18   : > { %v264_v6 = vmul.f32 %v263_v3, %v622_v2  ;;  %v266_v7 = vmul.f32 %v263_v3, %v620_v1  ;;  %v265_v12 = vmul.f32 %v263_v3, %v630_v8  ;;  %v267_v15 = vmul.f32 %v263_v3, %v632_v9  ;;  %s192_s6 = sld [smem:[#allocation3]] }
  0x19   : > { %252 = vrot.lane.b32.xlu1 %v242_v4, %s578_s25  ;;  %248 = vrot.lane.b32.xlu0 %v240_v5, %s578_s25  ;;  %v243_v17 = vmul.f32 %v239_v0, %v632_v9  ;;  %v269_v19 = vmul.f32 %v263_v3, %v635_v13  ;;  %v268_v20 = vmul.f32 %v263_v3, %v637_v14  ;;  %v300_v23 = vstv %s523_s26  ;;  %s201_s7 = sld [smem:[#allocation2]] }
  0x1a   : > { %v276_v10 = vrot.slane %v264_v6, 1  ;;  %v277_v11 = vrot.slane %v266_v7, 1  ;;  %v279_v21 = vrot.slane %v265_v12, 1  ;;  %v280_v22 = vrot.slane %v267_v15, 1 }
  0x1b   : > { %v284_v24 = vrot.slane %v269_v19, 1  ;;  %v282_v25 = vrot.slane %v268_v20, 1  ;;  %v301_v27 = vmul.f32 %v300_v23, %v622_v2  ;;  %v303_v28 = vmul.f32 %v300_v23, %v620_v1 }
  0x1c   : > { %v278_v16 = vsel %vm212_vm0, %v276_v10, %v277_v11  ;;  %v281_v26 = vsel %vm212_vm0, %v279_v21, %v280_v22  ;;  %v305_v29 = vmul.f32 %v300_v23, %v637_v14  ;;  %v302_v30 = vmul.f32 %v300_v23, %v630_v8 }
  0x1d   : > { %286 = vrot.lane.b32.xlu2 %v278_v16, %s578_s25  ;;  %v285_v31 = vsel %vm212_vm0, %v280_v22, %v284_v24  ;;  %v283_v32 = vsel %vm212_vm0, %v277_v11, %v282_v25  ;;  %v304_v33 = vmul.f32 %v300_v23, %v632_v9  ;;  %v313_v34 = vrot.slane %v301_v27, 2 }
  0x1e   : > { %v314_v35 = vrot.slane %v303_v28, 2  ;;  %v319_v36 = vrot.slane %v305_v29, 2  ;;  %v316_v37 = vrot.slane %v302_v30, 2  ;;  %v306_v40 = vmul.f32 %v300_v23, %v635_v13 }
  0x1f   : > { %v317_v38 = vrot.slane %v304_v33, 2  ;;  %v337_v44 = vstv %s518_s27  ;;  %v361_v46 = vstv %s521_s28  ;;  %v398_v63 = vstv %s524_s30 }
  0x20   : > { %v315_v39 = vsel %vm229_vm1, %v313_v34, %v314_v35  ;;  %v320_v41 = vsel %vm229_vm1, %v314_v35, %v319_v36  ;;  %v321_v43 = vrot.slane %v306_v40, 2  ;;  %v339_v47 = vmul.f32 %v337_v44, %v630_v8 }
  0x21   : > { %254 = vrot.lane.b32.xlu1 %v243_v17, %s578_s25  ;;  %250 = vrot.lane.b32.xlu0 %v241_v18, %s578_s25  ;;  %v318_v42 = vsel %vm229_vm1, %v316_v37, %v317_v38  ;;  %v338_v48 = vmul.f32 %v337_v44, %v622_v2  ;;  %v362_v49 = vmul.f32 %v361_v46, %v622_v2  ;;  %v205_v34 = vstv %s519_s4 }
  0x22   : > { %v322_v45 = vsel %vm229_vm1, %v317_v38, %v321_v43  ;;  %v364_v50 = vmul.f32 %v361_v46, %v620_v1  ;;  %v340_v51 = vmul.f32 %v337_v44, %v620_v1  ;;  %v363_v54 = vmul.f32 %v361_v46, %v630_v8 }
  0x23   : > { %v374_v52 = vrot.slane %v362_v49, 1  ;;  %v365_v55 = vmul.f32 %v361_v46, %v632_v9  ;;  %v341_v56 = vmul.f32 %v337_v44, %v632_v9  ;;  %v367_v57 = vmul.f32 %v361_v46, %v635_v13 }
  0x24   : > { %v375_v53 = vrot.slane %v364_v50, 1  ;;  %v366_v59 = vmul.f32 %v361_v46, %v637_v14  ;;  %v377_v60 = vrot.slane %v363_v54, 1  ;;  %v399_v4 = vmul.f32 %v398_v63, %v622_v2 }
  0x25   : > { %288 = vrot.lane.b32.xlu2 %v281_v26, %s578_s25  ;;  %v378_v61 = vrot.slane %v365_v55, 1  ;;  %v382_v62 = vrot.slane %v367_v57, 1  ;;  %v401_v5 = vmul.f32 %v398_v63, %v620_v1  ;;  %v403_v7 = vmul.f32 %v398_v63, %v637_v14 }
  0x26   : > { %v376_v58 = vsel %vm212_vm0, %v374_v52, %v375_v53  ;;  %v380_v0 = vrot.slane %v366_v59, 1  ;;  %v400_v11 = vmul.f32 %v398_v63, %v630_v8  ;;  %v402_v12 = vmul.f32 %v398_v63, %v632_v9 }
  0x27   : > { %v379_v3 = vsel %vm212_vm0, %v377_v60, %v378_v61  ;;  %v383_v6 = vsel %vm212_vm0, %v378_v61, %v382_v62  ;;  %v411_v15 = vrot.slane %v399_v4, 2  ;;  %v412_v16 = vrot.slane %v401_v5, 2 }
  0x28   : > { %v381_v10 = vsel %vm212_vm0, %v375_v53, %v380_v0  ;;  %v417_v17 = vrot.slane %v403_v7, 2  ;;  %v414_v18 = vrot.slane %v400_v11, 2  ;;  %v415_v19 = vrot.slane %v402_v12, 2 }
  0x29   : > { %292 = vrot.lane.b32.xlu1 %v285_v31, %s578_s25  ;;  %290 = vrot.lane.b32.xlu0 %v283_v32, %s578_s25  ;;  %v413_v20 = vsel %vm229_vm1, %v411_v15, %v412_v16  ;;  %v404_v21 = vmul.f32 %v398_v63, %v635_v13  ;;  %v207_v37 = vmul.f32 %v205_v34, %v620_v1 }
  0x2a   : > { %v418_v22 = vsel %vm229_vm1, %v412_v16, %v417_v17  ;;  %v416_v8 = vsel %vm229_vm1, %v414_v18, %v415_v19  ;;  %v206_v38 = vmul.f32 %v205_v34, %v622_v2  ;;  %v208_v40 = vmul.f32 %v205_v34, %v637_v14 }
  0x2b   : > { %v419_v9 = vrot.slane %v404_v21, 2 }
  0x2c   : > { %v213_v44 = vrot.slane %v206_v38, 1 }
  0x2d   : > { %323 = vrot.lane.b32.xlu2 %v315_v39, %s578_s25  ;;  %v420_v23 = vsel %vm229_vm1, %v415_v19, %v419_v9  ;;  %v222_v39 = vstv %s522_s5 }
  0x2e   : > { %v224_v43 = vmul.f32 %v222_v39, %v620_v1  ;;  %v225_v49 = vmul.f32 %v222_v39, %v637_v14 }
  0x30   : > { %v231_v52 = vrot.slane %v224_v43, 2 }
  0x31   : > { %327 = vrot.lane.b32.xlu1 %v320_v41, %s578_s25  ;;  %325 = vrot.lane.b32.xlu0 %v318_v42, %s578_s25  ;;  %v202_v41 = vstv %s192_s6  ;;  %v214_v42 = vrot.slane %v207_v37, 1 }
  0x32   : > { %v203_v50 = vmul.f32 %v202_v41, %v622_v2  ;;  %v204_v55 = vmul.f32 %v202_v41, %v620_v1 }
  0x33   : > { %v215_v53 = vsel %vm212_vm0, %v213_v44, %v214_v42 }
  0x35   : > { %329 = vrot.lane.b32.xlu2 %v322_v45, %s578_s25  ;;  %v223_v45 = vmul.f32 %v222_v39, %v622_v2 }
  0x37   : > { %v230_v54 = vrot.slane %v223_v45, 2 }
  0x39   : > { %348 = vrot.lane.b32.xlu1 %v339_v47, %s579_s29  ;;  %346 = vrot.lane.b32.xlu0 %v338_v48, %s579_s29  ;;  %v216_v48 = vrot.slane %v208_v40, 1  ;;  %v232_v59 = vsel %vm229_vm1, %v230_v54, %v231_v52 }
  0x3b   : > { %v217_v57 = vsel %vm212_vm0, %v214_v42, %v216_v48 }
  0x3c   : > { %v221_v60 = vadd.f32 %v217_v57, %v204_v55 }
  0x3d   : > { %350 = vrot.lane.b32.xlu2 %v340_v51, %s579_s29 }
  0x41   : > { %384 = vrot.lane.b32.xlu1 %v376_v58, %s579_s29  ;;  %352 = vrot.lane.b32.xlu0 %v341_v56, %s579_s29  ;;  %v233_v56 = vrot.slane %v225_v49, 2  ;;  %v220_v58 = vadd.f32 %v215_v53, %v203_v50 }
  0x43   : > { %v234_v14 = vsel %vm229_vm1, %v231_v52, %v233_v56  ;;  %v237_v2 = vadd.f32 %v232_v59, %v220_v58 }
  0x44   : > { %v238_v0 = vadd.f32 %v234_v14, %v221_v60 }
  0x45   : > { %386 = vrot.lane.b32.xlu2 %v379_v3, %s579_s29 }
  0x49   : > { %390 = vrot.lane.b32.xlu1 %v383_v6, %s579_s29  ;;  %388 = vrot.lane.b32.xlu0 %v381_v10, %s579_s29 }
  0x4d   : > { %421 = vrot.lane.b32.xlu2 %v413_v20, %s579_s29 }
  0x51   : > { %425 = vrot.lane.b32.xlu1 %v418_v22, %s579_s29  ;;  %423 = vrot.lane.b32.xlu0 %v416_v8, %s579_s29 }
  0x55   : > { %427 = vrot.lane.b32.xlu2 %v420_v23, %s579_s29 }
  0x77   : > { %v287_v24 = vpop.permute.xlu2 %286 }
  0x7f   : > { %v289_v25 = vpop.permute.xlu2 %288 }
  0x80   : > { %v294_v11 = vsel %vm256_vm2, %v287_v24, %v289_v25 }
  0x87   : > { %v324_v13 = vpop.permute.xlu2 %323 }
  0x8b   : > { %v253_v26 = vpop.permute.xlu1 %252  ;;  %v249_v27 = vpop.permute.xlu0 %248 }
  0x8f   : > { %v330_v30 = vpop.permute.xlu2 %329 }
  0x93   : > { %v255_v28 = vpop.permute.xlu1 %254  ;;  %v251_v29 = vpop.permute.xlu0 %250 }
  0x94   : > { %v257_v63 = vsel %vm256_vm2, %v249_v27, %v251_v29  ;;  %v258_v4 = vsel %vm256_vm2, %v253_v26, %v255_v28  ;;  %v435_v28 = vstv %s201_s7 }
  0x95   : > { %v261_v5 = vadd.f32 %v257_v63, %v237_v2  ;;  %v262_v1 = vadd.f32 %v258_v4, %v238_v0 }
  0x97   : > { %v351_v33 = vpop.permute.xlu2 %350  ;;  %v298_v17 = vadd.f32 %v294_v11, %v261_v5 }
  0x9b   : > { %v293_v31 = vpop.permute.xlu1 %292  ;;  %v291_v32 = vpop.permute.xlu0 %290 }
  0x9c   : > { %v295_v6 = vsel %vm256_vm2, %v291_v32, %v293_v31 }
  0x9d   : > { %v299_v16 = vadd.f32 %v295_v6, %v262_v1 }
  0x9f   : > { %v387_v51 = vpop.permute.xlu2 %386 }
  0xa3   : > { %v328_v35 = vpop.permute.xlu1 %327  ;;  %v326_v36 = vpop.permute.xlu0 %325 }
  0xa4   : > { %v332_v12 = vsel %vm256_vm2, %v328_v35, %v330_v30  ;;  %v331_v15 = vsel %vm256_vm2, %v324_v13, %v326_v36 }
  0xa5   : > { %v336_v20 = vadd.f32 %v332_v12, %v299_v16  ;;  %v335_v21 = vadd.f32 %v331_v15, %v298_v17 }
  0xa7   : > { %v422_v3 = vpop.permute.xlu2 %421 }
  0xab   : > { %v349_v46 = vpop.permute.xlu1 %348  ;;  %v347_v47 = vpop.permute.xlu0 %346 }
  0xac   : > { %v355_v18 = vsel %vm354_vm3, %v347_v47, %v349_v46 }
  0xad   : > { %v359_v9 = vadd.f32 %v355_v18, %v335_v21 }
  0xaf   : > { %v428_v26 = vpop.permute.xlu2 %427 }
  0xb3   : > { %v385_v61 = vpop.permute.xlu1 %384  ;;  %v353_v62 = vpop.permute.xlu0 %352 }
  0xb4   : > { %v356_v19 = vsel %vm354_vm3, %v351_v33, %v353_v62  ;;  %v392_v22 = vsel %vm354_vm3, %v385_v61, %v387_v51 }
  0xb5   : > { %v360_v23 = vadd.f32 %v356_v19, %v336_v20  ;;  %v396_v24 = vadd.f32 %v392_v22, %v359_v9 }
  0xbb   : > { %v391_v7 = vpop.permute.xlu1 %390  ;;  %v389_v10 = vpop.permute.xlu0 %388 }
  0xbc   : > { %v393_v8 = vsel %vm354_vm3, %v389_v10, %v391_v7 }
  0xbd   : > { %v397_v25 = vadd.f32 %v393_v8, %v360_v23 }
  0xc3   : > { %v426_v27 = vpop.permute.xlu1 %425  ;;  %v424_v13 = vpop.permute.xlu0 %423 }
  0xc4   : > { %v430_v29 = vsel %vm354_vm3, %v426_v27, %v428_v26  ;;  %v429_v30 = vsel %vm354_vm3, %v422_v3, %v424_v13 }
  0xc5   : > { %v434_v31 = vadd.f32 %v430_v29, %v397_v25  ;;  %v433_v32 = vadd.f32 %v429_v30, %v396_v24 }
  0xc7   : > { %v437_v33 = vadd.f32 %v435_v28, %v434_v31  ;;  %v436_v34 = vadd.f32 %v435_v28, %v433_v32 }
  0xc9   : > { %439 = vst [vmem:[%s185_s11 + $0x8] sm:$0xff] %v437_v33 }
  0xca   : > { %438 = vst [vmem:[%s185_s11] sm:$0xff] %v436_v34 }
  0xcb PF: > { %s15_s14 = sadd.s32 1, %s575_s14  }
  0xcc   : > { %p12_p7 = scmp.ge.s32.totalorder %s15_s14, 10  }
  0xce   :  { %14 = sbr.rel (!%p12_p7) target bundleno = 3 (0x3), region = 67 }
  0xd3   :  { %461 = vsyncpa [#allocation4], 1 }
  0xd4   :  { %463 = vsyncpa [#allocation4 + $0x1], 1 }

</bundles_post_ra>
